<compile_context>
chip_gen: v7x
topology: tpu7x:2x2x1
jax: 0.10.0
libtpu: 0.0.40
codegen_flags: <defaults>
</compile_context>

<pallas_src>
import functools
import math

import jax
import jax.numpy as jnp
from jax.experimental import pallas as pl
from jax.experimental.pallas import tpu as pltpu


def _ls_loss_kernel(logp_ref, tgt_ref, out_ref, acc_ref, *,
                    neg_smoothing, neg_confidence, padding_idx, padding_col,
                    v_real, tv, cw, ragged, compute_dtype):
    """One (batch-block, vocab-tile) step of sum_{rows,cols} -p * logp."""
    k = pl.program_id(1)                                  # vocab (reduction) axis

    @pl.when(k == 0)
    def _():
        acc_ref[...] = jnp.zeros_like(acc_ref)

    tb = acc_ref.shape[0]
    off = k * tv                                          # dynamic tile offset
    tgt = tgt_ref[...]                                    # (tb, 1) int32
    lane = jax.lax.broadcasted_iota(jnp.int32, (tb, cw), 1)
    tgt_rel = tgt - off                                   # (tb, 1)

    # Negative weights so the accumulator directly holds the cross term -p*logp.
    w_conf = jnp.asarray(neg_confidence, compute_dtype)
    w_sm = jnp.asarray(neg_smoothing, compute_dtype)
    w_zero = jnp.asarray(0.0, compute_dtype)

    part = None
    for c in range(tv // cw):                             # trace-time loop, 128-lane chunks
        base = c * cw
        lp = logp_ref[:, base:base + cw].astype(compute_dtype)     # (tb, cw)
        # Target column overrides the zeroed padding column (matches PyTorch
        # scatter_ applied after one_hot[padding_idx] = 0).
        w = jnp.where(lane == (tgt_rel - base), w_conf,
                      jnp.where(lane == (padding_col - off - base), w_zero, w_sm))
        prod = w * lp
        if ragged:
            # Columns beyond the real vocab in the last tile hold stale VMEM
            # garbage from a partial DMA -> drop them.
            prod = jnp.where(lane < (v_real - off - base), prod, w_zero)
        contrib = prod.astype(jnp.float32)
        part = contrib if part is None else part + contrib
    acc_ref[...] += part                                  # (tb, cw) f32 accumulator

    @pl.when(k == pl.num_programs(1) - 1)
    def _():
        row = jnp.sum(acc_ref[...], axis=1, keepdims=True)          # (tb, 1)
        row = jnp.where(tgt == padding_idx, 0.0, row)               # padded rows -> 0
        # Every lane/sublane of the (8, 128) slab holds the same block-partial
        # scalar; the wrapper reads [b, 0, 0] only (do NOT sum the whole slab).
        out_ref[...] = jnp.full(out_ref.shape, jnp.sum(row), out_ref.dtype)


def _choose_vocab_tile(V, cap):
    """Return (tv, nk, ragged). tv is a multiple of 128 (or the full dim when V<128)
    and never exceeds V, so only the *last* grid block may be partial."""
    if V % 128 == 0 and V <= cap:
        return V, 1, False
    if V < 128:
        return V, 1, False                                # full-dim escape hatch
    top = min(cap, (V // 128) * 128)
    floor = min(512, top)
    t = top
    while t >= floor:                                     # prefer a big exact divisor
        if V % t == 0:
            return t, V // t, False
        t -= 128
    tv = top
    return tv, -(-V // tv), True                          # ragged last tile, masked


def _choose_batch_tile(B):
    cap = 256
    if B >= 16:
        # Keep nb >= 2 so the "parallel" batch axis shards across both TCs on v7x.
        cap = min(cap, max(8, (B // 2) // 8 * 8))
    if B <= cap:
        return B
    t = cap
    while t >= 8:
        if B % t == 0:
            return t
        t -= 8
    return B                                              # fallback: full batch


def label_smoothing_loss(output, target, *, label_smoothing, tgt_vocab_size,
                         ignore_index=-100, tb=None, tv=None):
    """output: (B, V) float log-probs (f32 or bf16); target: (B,) int. Scalar loss."""
    assert 0.0 < label_smoothing <= 1.0
    assert tgt_vocab_size > 2
    B, V = output.shape
    assert V == tgt_vocab_size

    itemsize = jnp.dtype(output.dtype).itemsize
    cap = 8192 if itemsize <= 2 else 4096
    if tv is None:
        tv, nk, ragged = _choose_vocab_tile(V, cap)
    else:
        assert tv <= V and (tv % 128 == 0 or (tv == V and V < 128)), \
            "tv override must be a multiple of 128 (and <= V)"
        nk = -(-V // tv)
        ragged = (nk * tv != V)
    cw = min(tv, 128)

    if tb is None:
        tb = _choose_batch_tile(B)
    else:
        assert tb == B or (tb % 8 == 0 and B % tb == 0)
    nb = B // tb
    assert nb * tb == B, "batch tile must divide B"

    smoothing_value = float(label_smoothing) / (tgt_vocab_size - 2)
    confidence = 1.0 - float(label_smoothing)
    # PyTorch `one_hot[padding_idx] = 0` uses (possibly negative) Python indexing,
    # while the padded-row mask compares against the raw ignore_index value.
    padding_col = ignore_index % tgt_vocab_size if ignore_index < 0 else ignore_index
    compute_dtype = jnp.bfloat16 if output.dtype == jnp.bfloat16 else jnp.float32

    kernel = functools.partial(
        _ls_loss_kernel,
        neg_smoothing=-smoothing_value,
        neg_confidence=-confidence,
        padding_idx=int(ignore_index),
        padding_col=int(padding_col),
        v_real=int(V), tv=int(tv), cw=int(cw), ragged=bool(ragged),
        compute_dtype=compute_dtype,
    )

    tgt2d = target.astype(jnp.int32).reshape(B, 1)

    # VMEM budget: logp double-buffer + lane-padded target double-buffer + acc + out.
    vmem_need = (2 * tb * tv * itemsize + 2 * tb * 128 * 4
                 + tb * cw * 4 + 2 * 8 * 128 * 4)
    vmem_limit = int(min(max(3 * vmem_need // 2 + (2 << 20), 16 << 20), 48 << 20))

    partials = pl.pallas_call(
        kernel,
        out_shape=jax.ShapeDtypeStruct((nb, 8, 128), jnp.float32),
        grid_spec=pltpu.PrefetchScalarGridSpec(
            num_scalar_prefetch=0,
            grid=(nb, nk),
            in_specs=[
                pl.BlockSpec((tb, tv), lambda b, k: (b, k)),   # log-prob tile (native dtype)
                pl.BlockSpec((tb, 1), lambda b, k: (b, 0)),    # targets (resident per block)
            ],
            out_specs=pl.BlockSpec((1, 8, 128), lambda b, k: (b, 0, 0)),
            scratch_shapes=[pltpu.VMEM((tb, cw), jnp.float32)],
        ),
        compiler_params=pltpu.CompilerParams(
            dimension_semantics=("parallel", "arbitrary"),     # batch parallel, vocab reduce
            vmem_limit_bytes=vmem_limit),
    )(output, tgt2d)

    cross = jnp.sum(partials[:, 0, 0])                    # one partial per batch block

    # Hoisted entropy term sum(p * log p): per non-padded row it is
    #   (V - 2) * sv * log(sv) + conf * log(conf),
    # plus one extra sv*log(sv) for the rare non-padded row whose target equals
    # padding_col (only possible with a negative ignore_index), because scatter_
    # overrides the zeroed padding column leaving V-1 smoothing entries.
    log_sv = math.log(smoothing_value)
    conf_log_conf = confidence * math.log(confidence) if confidence > 0.0 else 0.0
    row_entropy = (tgt_vocab_size - 2) * smoothing_value * log_sv + conf_log_conf

    tgt_i32 = target.astype(jnp.int32)
    non_pad = tgt_i32 != ignore_index
    n_non_pad = jnp.sum(non_pad.astype(jnp.float32))
    n_corr = jnp.sum((non_pad & (tgt_i32 == padding_col)).astype(jnp.float32))
    entropy = row_entropy * n_non_pad + (smoothing_value * log_sv) * n_corr

    return entropy + cross


def _reference_loss(logp, target, *, label_smoothing, ignore_index):
    """Pure-JAX mirror of the PyTorch forward (F.kl_div with xlogy(0,.) = 0)."""
    B, V = logp.shape
    sv = label_smoothing / (V - 2)
    conf = 1.0 - label_smoothing
    pad_col = ignore_index % V if ignore_index < 0 else ignore_index
    p = jnp.full((B, V), sv, jnp.float32)
    p = p.at[:, pad_col].set(0.0)
    p = p.at[jnp.arange(B), target].set(conf)
    p = jnp.where((target == ignore_index)[:, None], 0.0, p)
    logp32 = logp.astype(jnp.float32)
    return jnp.sum(jnp.where(p > 0, p * (jnp.log(jnp.where(p > 0, p, 1.0)) - logp32), 0.0))


if __name__ == "__main__":
    key = jax.random.PRNGKey(0)
    B = 16
    label_smoothing = 0.1

    # --- Test 1: explicit small tiles (2 batch blocks x 2 vocab tiles), pad idx 0 ---
    V = 512
    ignore_index = 0
    k1, k2 = jax.random.split(key)
    logits = jax.random.normal(k1, (B, V), dtype=jnp.float32)
    logp = jax.nn.log_softmax(logits, axis=-1)
    target = jax.random.randint(k2, (B,), 1, V, dtype=jnp.int32)
    target = target.at[0].set(ignore_index)               # one padded row

    loss = label_smoothing_loss(logp, target, label_smoothing=label_smoothing,
                                tgt_vocab_size=V, ignore_index=ignore_index,
                                tb=8, tv=256)
    loss = jax.block_until_ready(loss)
    ref = _reference_loss(logp, target, label_smoothing=label_smoothing,
                          ignore_index=ignore_index)
    assert jnp.allclose(loss, ref, rtol=1e-5, atol=1e-4), (loss, ref)

    # --- Test 2: default tiling, negative ignore_index, target == padding_col row ---
    ignore_index2 = -100
    target2 = jax.random.randint(k2, (B,), 0, V, dtype=jnp.int32)
    target2 = target2.at[1].set(ignore_index2 % V)         # exercises the entropy correction
    loss2 = label_smoothing_loss(logp, target2, label_smoothing=label_smoothing,
                                 tgt_vocab_size=V, ignore_index=ignore_index2)
    loss2 = jax.block_until_ready(loss2)
    ref2 = _reference_loss(logp, target2, label_smoothing=label_smoothing,
                           ignore_index=ignore_index2)
    assert jnp.allclose(loss2, ref2, rtol=1e-5, atol=1e-4), (loss2, ref2)

    # --- Test 3: ragged vocab (V not a multiple of the tile -> masked tail tile) ---
    V3 = 576
    k3, k4 = jax.random.split(k1)
    logp3 = jax.nn.log_softmax(jax.random.normal(k3, (B, V3), jnp.float32), axis=-1)
    target3 = jax.random.randint(k4, (B,), 1, V3, dtype=jnp.int32)
    target3 = target3.at[0].set(0)
    loss3 = label_smoothing_loss(logp3, target3, label_smoothing=label_smoothing,
                                 tgt_vocab_size=V3, ignore_index=0, tv=256)
    loss3 = jax.block_until_ready(loss3)
    ref3 = _reference_loss(logp3, target3, label_smoothing=label_smoothing,
                           ignore_index=0)
    assert jnp.allclose(loss3, ref3, rtol=1e-5, atol=1e-4), (loss3, ref3)

    # --- Test 4: bf16 log-probs (packed-VALU in-kernel path), loose tolerance ---
    loss4 = label_smoothing_loss(logp.astype(jnp.bfloat16), target,
                                 label_smoothing=label_smoothing,
                                 tgt_vocab_size=V, ignore_index=ignore_index)
    loss4 = jax.block_until_ready(loss4)
    assert jnp.allclose(loss4, ref, rtol=3e-2, atol=1e-2), (loss4, ref)

    print("KERNEL_OK")
</pallas_src>

<mosaic_0001>
module attributes {stable_mosaic.version = 11 : i64} {
  func.func @_ls_loss_kernel(%arg0: i32, %arg1: i32, %arg2: memref<8x256xf32, #tpu.memory_space<vmem>>, %arg3: memref<8x1xi32, #tpu.memory_space<vmem>>, %arg4: memref<1x8x128xf32, #tpu.memory_space<vmem>>, %arg5: memref<8x128xf32, #tpu.memory_space<vmem>>) attributes {dimension_semantics = [#tpu.dimension_semantics<parallel>, #tpu.dimension_semantics<arbitrary>], iteration_bounds = array<i64: 2, 2>, scalar_prefetch = 0 : i64, scratch_operands = 1 : i64, tpu.core_type = #tpu.core_type<tc>, window_params = [{transform_indices = @transform_0, window_bounds = array<i64: 8, 256>}, {transform_indices = @transform_1, window_bounds = array<i64: 8, 1>}, {transform_indices = @transform_2, window_bounds = array<i64: 1, 8, 128>}]} {
    %c0_i32 = arith.constant 0 : i32
    %0 = arith.cmpi eq, %arg1, %c0_i32 : i32
    %1 = arith.extui %0 : i1 to i32
    %c0_i32_0 = arith.constant 0 : i32
    %2 = arith.cmpi ne, %1, %c0_i32_0 : i32
    scf.if %2 {
      %cst_20 = arith.constant 0.000000e+00 : f32
      %45 = vector.broadcast %cst_20 : f32 to vector<8x128xf32>
      %c0_21 = arith.constant 0 : index
      %c0_22 = arith.constant 0 : index
      %46 = vector.load %arg5[%c0_21, %c0_22] : memref<8x128xf32, #tpu.memory_space<vmem>>, vector<8x128xf32>
      tpu.vector_store %arg5[%c0_21, %c0_22], %45 {strides = array<i32>} : memref<8x128xf32, #tpu.memory_space<vmem>>, vector<8x128xf32>,
    } else {
    }
    %c256_i32 = arith.constant 256 : i32
    %3 = arith.muli %arg1, %c256_i32 : i32
    %c0 = arith.constant 0 : index
    %c0_1 = arith.constant 0 : index
    %4 = vector.load %arg3[%c0, %c0_1] : memref<8x1xi32, #tpu.memory_space<vmem>>, vector<8x1xi32>
    %5 = tpu.iota {dimensions = array<i32: 1>} : vector<8x128xi32>
    %6 = vector.broadcast %3 : i32 to vector<8x1xi32>
    %7 = arith.subi %4, %6 : vector<8x1xi32>
    %c0_2 = arith.constant 0 : index
    %c0_3 = arith.constant 0 : index
    %8 = vector.load %arg2[%c0_2, %c0_3] : memref<8x256xf32, #tpu.memory_space<vmem>>, vector<8x128xf32>
    %c0_i32_4 = arith.constant 0 : i32
    %9 = vector.broadcast %c0_i32_4 : i32 to vector<8x1xi32>
    %10 = arith.subi %7, %9 : vector<8x1xi32>
    %11 = vector.broadcast %10 : vector<8x1xi32> to vector<8x128xi32>
    %12 = arith.cmpi eq, %5, %11 : vector<8x128xi32>
    %c0_i32_5 = arith.constant 0 : i32
    %13 = arith.subi %c0_i32_5, %3 : i32
    %c0_i32_6 = arith.constant 0 : i32
    %14 = arith.subi %13, %c0_i32_6 : i32
    %15 = vector.broadcast %14 : i32 to vector<8x128xi32>
    %16 = arith.cmpi eq, %5, %15 : vector<8x128xi32>
    %cst = arith.constant 0.000000e+00 : f32
    %cst_7 = arith.constant -1.96078428E-4 : f32
    %17 = vector.broadcast %cst : f32 to vector<8x128xf32>
    %18 = vector.broadcast %cst_7 : f32 to vector<8x128xf32>
    %19 = arith.select %16, %17, %18 : vector<8x128xi1>, vector<8x128xf32>
    %cst_8 = arith.constant -0.899999976 : f32
    %20 = vector.broadcast %cst_8 : f32 to vector<8x128xf32>
    %21 = arith.select %12, %20, %19 : vector<8x128xi1>, vector<8x128xf32>
    %22 = arith.mulf %21, %8 : vector<8x128xf32>
    %c0_9 = arith.constant 0 : index
    %c128 = arith.constant 128 : index
    %23 = vector.load %arg2[%c0_9, %c128] : memref<8x256xf32, #tpu.memory_space<vmem>>, vector<8x128xf32>
    %c128_i32 = arith.constant 128 : i32
    %24 = vector.broadcast %c128_i32 : i32 to vector<8x1xi32>
    %25 = arith.subi %7, %24 : vector<8x1xi32>
    %26 = vector.broadcast %25 : vector<8x1xi32> to vector<8x128xi32>
    %27 = arith.cmpi eq, %5, %26 : vector<8x128xi32>
    %c0_i32_10 = arith.constant 0 : i32
    %28 = arith.subi %c0_i32_10, %3 : i32
    %c128_i32_11 = arith.constant 128 : i32
    %29 = arith.subi %28, %c128_i32_11 : i32
    %30 = vector.broadcast %29 : i32 to vector<8x128xi32>
    %31 = arith.cmpi eq, %5, %30 : vector<8x128xi32>
    %cst_12 = arith.constant 0.000000e+00 : f32
    %cst_13 = arith.constant -1.96078428E-4 : f32
    %32 = vector.broadcast %cst_12 : f32 to vector<8x128xf32>
    %33 = vector.broadcast %cst_13 : f32 to vector<8x128xf32>
    %34 = arith.select %31, %32, %33 : vector<8x128xi1>, vector<8x128xf32>
    %cst_14 = arith.constant -0.899999976 : f32
    %35 = vector.broadcast %cst_14 : f32 to vector<8x128xf32>
    %36 = arith.select %27, %35, %34 : vector<8x128xi1>, vector<8x128xf32>
    %37 = arith.mulf %36, %23 : vector<8x128xf32>
    %38 = arith.addf %22, %37 : vector<8x128xf32>
    %c0_15 = arith.constant 0 : index
    %c0_16 = arith.constant 0 : index
    %39 = vector.load %arg5[%c0_15, %c0_16] : memref<8x128xf32, #tpu.memory_space<vmem>>, vector<8x128xf32>
    %40 = arith.addf %39, %38 : vector<8x128xf32>
    %c0_17 = arith.constant 0 : index
    %c0_18 = arith.constant 0 : index
    %41 = vector.load %arg5[%c0_17, %c0_18] : memref<8x128xf32, #tpu.memory_space<vmem>>, vector<8x128xf32>
    tpu.vector_store %arg5[%c0_17, %c0_18], %40 {strides = array<i32>} : memref<8x128xf32, #tpu.memory_space<vmem>>, vector<8x128xf32>,
    %c1_i32 = arith.constant 1 : i32
    %42 = arith.cmpi eq, %arg1, %c1_i32 : i32
    %43 = arith.extui %42 : i1 to i32
    %c0_i32_19 = arith.constant 0 : i32
    %44 = arith.cmpi ne, %43, %c0_i32_19 : i32
    scf.if %44 {
      %c0_20 = arith.constant 0 : index
      %c0_21 = arith.constant 0 : index
      %45 = vector.load %arg5[%c0_20, %c0_21] : memref<8x128xf32, #tpu.memory_space<vmem>>, vector<8x128xf32>
      %cst_22 = arith.constant dense<0.000000e+00> : vector<8xf32>
      %46 = vector.multi_reduction <add>, %45, %cst_22 [1] : vector<8x128xf32> to vector<8xf32>
      %47 = vector.shape_cast %46 : vector<8xf32> to vector<8x1xf32>
      %c0_i32_23 = arith.constant 0 : i32
      %48 = vector.broadcast %c0_i32_23 : i32 to vector<8x1xi32>
      %49 = arith.cmpi eq, %4, %48 : vector<8x1xi32>
      %cst_24 = arith.constant 0.000000e+00 : f32
      %50 = vector.broadcast %cst_24 : f32 to vector<8x1xf32>
      %51 = arith.select %49, %50, %47 : vector<8x1xi1>, vector<8x1xf32>
      %52 = vector.shape_cast %51 : vector<8x1xf32> to vector<1x8x1xf32>
      %cst_25 = arith.constant dense<0.000000e+00> : vector<1xf32>
      %53 = vector.multi_reduction <add>, %52, %cst_25 [1, 2] : vector<1x8x1xf32> to vector<1xf32>
      %54 = vector.shape_cast %53 : vector<1xf32> to vector<1x1x1xf32>
      %55 = vector.extract %54[0, 0, 0] : f32 from vector<1x1x1xf32>
      %56 = vector.broadcast %55 : f32 to vector<1x8x128xf32>
      %c0_26 = arith.constant 0 : index
      %c0_27 = arith.constant 0 : index
      %c0_28 = arith.constant 0 : index
      %57 = vector.load %arg4[%c0_26, %c0_27, %c0_28] : memref<1x8x128xf32, #tpu.memory_space<vmem>>, vector<1x8x128xf32>
      tpu.vector_store %arg4[%c0_26, %c0_27, %c0_28], %56 {strides = array<i32>} : memref<1x8x128xf32, #tpu.memory_space<vmem>>, vector<1x8x128xf32>,
    } else {
    }
    return
  }
  func.func @transform_0(%arg0: i32, %arg1: i32) -> (i32, i32) {
    %c0_i32 = arith.constant 0 : i32
    return %arg0, %arg1 : i32, i32
  }
  func.func @transform_1(%arg0: i32, %arg1: i32) -> (i32, i32) {
    %c0_i32 = arith.constant 0 : i32
    %c0_i32_0 = arith.constant 0 : i32
    return %arg0, %c0_i32 : i32, i32
  }
  func.func @transform_2(%arg0: i32, %arg1: i32) -> (i32, i32, i32) {
    %c0_i32 = arith.constant 0 : i32
    %c0_i32_0 = arith.constant 0 : i32
    %c0_i32_1 = arith.constant 0 : i32
    return %arg0, %c0_i32, %c0_i32_0 : i32, i32, i32
  }
}

</mosaic_0001>

<bundles_post_ra>
// kernel: tpu_custom_call.1
= control target key start
LH: loop header
LB: loop body
LE: loop exit
PB: predicated region body
PF: predicated region fallthrough
CT: control target
= control target key end

     0   :  { %7 = vsyncpa [#allocation4], 0  ;;  %s904_s0 = inlined_call_operand.hbm [shape: f32[16,512], index: 0, kind: input, shape index: {}]   ;;  %s905_s1 = inlined_call_operand.vmem [shape: s32[16,1], index: 1, kind: input, shape index: {}]   ;;  %s906_s2 = inlined_call_operand.hbm [shape: f32[2,8,128], index: 2, kind: output, shape index: {}]  }
   0x1   :  { %9 = vsyncpa [#allocation4 + $0x1], 0 }
   0x2   :  { %10 = vsyncpa [#allocation5], 0 }
   0x3   :  { %12 = vsyncpa [#allocation5 + $0x1], 0  ;;  %s666_s9 = smov 0   ;;  %s668_s10 = smov 0  }
   0x4   :  { %s670_s11 = smov 0   ;;  %s672_s12 = smov 0  }
   0x5   :  { %s674_s13 = smov 0   ;;  %s676_s14 = smov 0  }
   0x6   :  { %s678_s15 = smov 0   ;;  %s680_s16 = smov 0  }
   0x7   :  { %s682_s17 = smov 0   ;;  %s684_s18 = smov 0  }
   0x8   :  { %s686_s19 = smov 0  }
   0x9 LB: > { %s364_s20 = sadd.s32 4294967295, %s644_s19   ;;  %s365_s21 = sadd.s32 4294967294, %s644_s19   ;;  %s644_s19 = sphi %s686_s19, %s18_s19   ;;  %s640_s18 = sphi %s684_s18, %s932_s18   ;;  %s636_s17 = sphi %s682_s17, %s931_s17   ;;  %s632_s16 = sphi %s680_s16, %s930_s16   ;;  %s628_s15 = sphi %s678_s15, %s929_s15   ;;  %s624_s14 = sphi %s676_s14, %s928_s14   ;;  %s620_s13 = sphi %s674_s13, %s927_s13   ;;  %s616_s12 = sphi %s672_s12, %s926_s12   ;;  %s612_s11 = sphi %s670_s11, %s925_s11   ;;  %s608_s10 = sphi %s668_s10, %s924_s10   ;;  %s604_s9 = sphi %s666_s9, %s923_s9  }
   0xa   : > { %s27_s22 = sadd.s32 1, %s636_s17  ;;  %s30_s23 = sadd.s32 1, %s640_s18 }
   0xb   : > { %p28_p0 = scmp.ge.s32.totalorder %s27_s22, 2  ;;  %s39_s24 = sadd.s32 1, %s624_s14 }
   0xc   : > { %p46_p1 = scmp.ne.s32.totalorder %s624_s14, %s620_s13  ;;  %p47_p2 = scmp.eq.s32.totalorder %s644_s19, 0 }
   0xd   : > { %s934_s22 = smov (%p28_p0, %s27_s22), 0  ;;  %s936_s23 = smov (!%p28_p0, %s30_s23), %s640_s18 }
   0xe   : > { %910 = sst [smem:[#allocation9_spill]] %s934_s22  ;;  %s35_s25 = ssub.s32 %s636_s17, %s934_s22 }
   0xf   : > { %p732_p3 = por %p47_p2, %p46_p1  ;;  %p32_p4 = scmp.ge.s32.totalorder %s936_s23, 2 }
  0x10   : > { %p52_p5 = scmp.ne.s32.totalorder %s620_s13, %s616_s12  ;;  %p53_p6 = scmp.eq.s32.totalorder %s364_s20, 0 }
  0x11   : > { %s91_s27 = sadd.s32 1, %s612_s11  ;;  %s938_s23 = smov (%p32_p4, %s936_s23), 0 }
  0x12   : > { %912 = sst [smem:[#allocation10_spill]] %s938_s23  ;;  %p740_p7 = por %p53_p6, %p52_p5 }
  0x13   : > { %p101_p8 = scmp.ne.s32.totalorder %s612_s11, %s608_s10  ;;  %s34_s29 = ssub.s32 %s640_s18, %s938_s23 }
  0x14   : > { %p102_p9 = scmp.eq.s32.totalorder %s364_s20, 3  ;;  %s36_s30 = sor.u32 %s35_s25, %s34_s29 }
  0x15   : > { %p89_p10 = scmp.eq.s32.totalorder %s34_s29, 0  ;;  %p37_p11 = scmp.eq.s32.totalorder %s36_s30, 0 }
  0x16   : > { %p748_p12 = por %p102_p9, %p101_p8  ;;  %p107_p13 = scmp.ne.s32.totalorder %s608_s10, %s604_s9 }
  0x17   : > { %s753_s4 = scalar_select %p89_p10, %s612_s11, %s91_s27  }
  0x18   : > { %s914_s3 = scalar_select %p748_p12, 1, 0 }
  0x19   : > { %s756_s5 = scalar_select %p37_p11, %s624_s14, %s39_s24  }
  0x1a   : > { %p108_p0 = scmp.eq.s32.totalorder %s365_s21, 3  ;;  %p398_p1 = scmp.lt.s32.totalorder %s644_s19, 4 }
  0x1b   : > { %s128_s7 = sand.u32 1, %s624_s14   ;;  %s369_s12 = sshll.u32 %s636_s17, 1 }
  0x1c   : > { %p761_p2 = por %p108_p0, %p107_p13  ;;  %s368_s8 = sshll.u32 %s128_s7, 4 }
  0x1d   : > { %s370_s20 = sshll.u32 %s640_s18, 2  ;;  %s132_s25 = scalar_lea.vmem [#allocation3], %s368_s8 }
  0x1e   : > { %s915_s6 = scalar_select %p761_p2, 1, 0 }
  0x1f   : > { %s142_s29 = sshll.u32 %s132_s25, 4  ;;  %s138_s30 = sadd.s32 %s370_s20, %s369_s12  ;;  %s768_s29 = int_to_ptr.vmem [resolvable:$true] %s142_s29 }
  0x20   : > { %s371_s24 = sshll.u32 %s138_s30, 7  ;;  %p772_p4 = pnand %p398_p1, %p732_p3 }
  0x21   : > { %s779_s22 = scalar_lea.hbm %s904_s0, %s371_s24  ;;  %s129_s8 = scalar_lea.sflag [#allocation4], %s128_s7 }
  0x22   : > { %s492_s12 = scalar_lea.hbm %s779_s22, 256  ;;  %p494_p3 = pneg %p772_p4 }
  0x23   : > { %p493_p8 = scmp.ne.s32.totalorder %s779_s22, %s492_s12  ;;  %s497_s20 = scalar_lea.hbm %s904_s0, 1024 }
  0x24   : > { %p498_p11 = scmp.lt.u32.totalorder %s779_s22, %s904_s0  ;;  %p499_p13 = scmp.lt.u32.totalorder %s497_s20, %s492_s12 }
  0x25   : > { %p495_p9 = pnand %p494_p3, %p493_p8  ;;  %p501_p1 = scmp.lt.u32.totalorder %s492_s12, %s779_s22 }
  0x26   : > { %p500_p0 = por %p499_p13, %p498_p11 }
  0x27   : > { %p496_p10 = pneg %p495_p9 }
  0x28   : > { %p502_p5 = por %p501_p1, %p500_p0 }
  0x2a   : > { %p503_p6 = pnand %p502_p5, %p496_p10 }
  0x2c   : > { %506 = shalt.err (!%p503_p6)
}
  0x2d   : > { %s507_s7 = scalar_lea.vmem %s768_s29, 256  ;;  %s646_s24 = smov [#allocation3]  }
  0x2e   : > { %p508_p8 = scmp.ne.s32.totalorder %s768_s29, %s507_s7  ;;  %s512_s21 = sshll.u32 %s646_s24, 4  ;;  %s513_s21 = int_to_ptr.vmem [resolvable:$false] %s512_s21 }
  0x2f   : > { %s514_s23 = scalar_lea.vmem %s513_s21, 512  ;;  %p515_p12 = scmp.lt.s32.totalorder %s768_s29, %s513_s21 }
  0x30   : > { %p510_p9 = pnand %p508_p8, %p494_p3  ;;  %p516_p11 = scmp.lt.s32.totalorder %s514_s23, %s507_s7 }
  0x32   : > { %p511_p2 = pneg %p510_p9  ;;  %p517_p13 = por %p516_p11, %p515_p12 }
  0x34   : > { %p518_p0 = pnand %p517_p13, %p511_p2 }
  0x36   : > { %521 = shalt.err (!%p518_p0)
}
  0x37   : > { %393 = dma.hbm_to_vmem [thread:$0]  (!%p772_p4), %s779_s22, 256, %s768_s29, %s129_s8  }
  0x38   : > { %p917_p5 = scmp.lt.s32.totalorder %s644_s19, 5  ;;  %p918_p6 = scmp.ge.s32.totalorder %s644_s19, 1 }
  0x3a   : > { %p155_p3 = pnand %p918_p6, %p917_p5 }
  0x3b   : > { %s160_s12 = sand.u32 (!%p155_p3), 1, %s620_s13  }
  0x3c   : > { %158 = sbr.rel (%p155_p3) target bundleno = 605 (0x25d), region = 28  ;;  %s813_s26 = sshll.u32 (!%p155_p3), %s160_s12, 4 }
  0x3d   : > { %s161_s20 = scalar_lea.sflag (!%p155_p3), [#allocation4], %s160_s12  ;;  %s164_s25 = scalar_lea.vmem (!%p155_p3), [#allocation3], %s813_s26 }
  0x43   : > { %595 = dma.done.wait (%p740_p7), %s161_s20, 256  }
  0x44   : > { %597 = vsyncadd (%p740_p7), %s161_s20, 4294967040  ;;  %s186_s22 = sand.u32 1, %s608_s10   ;;  %p190_p12 = scmp.lt.s32.totalorder %s632_s16, 1 }
  0x45   : > { %s824_s29 = sshll.u32 %s186_s22, 3  ;;  %p376_p2 = scmp.ne.s32.totalorder %s628_s15, 0 }
  0x46   : > { %s191_s27 = scalar_select %p190_p12, %s632_s16, 1 }
  0x47   : > { %s188_s21 = scalar_lea.vmem [#allocation6], %s824_s29  ;;  %197 = sbr.rel (%p376_p2) target bundleno = 78 (0x4e), region = 36  ;;  %v647_v0 = vmov (!%p376_p2), 0.0  }
  0x48   : > { %s375_s8 = sshll.u32 %s191_s27, 3  ;;  %198 = vst [vmem:[#allocation2] sm:$0xff] (!%p376_p2), %v647_v0 }
  0x49   : > { %s193_s24 = scalar_lea.vmem %s905_s1, %s375_s8 }
  0x4e PF: > { %s377_s28 = sshll.u32 %s628_s15, 8  ;;  %v200_v1 = vld [vmem:[%s193_s24] sm:$0xff]  ;;  %v648_v2 = vmov 0   ;;  %v201_v6 = vlaneseq  ;;  %v649_v11 = vmov -0.00019607843   ;;  %v205_v14 = vld [vmem:[%s164_s25] sm:$0xff] }
  0x4f   : > { %491 = vset.pattern.permute.xlu0 %v648_v2  ;;  %v203_v3 = vstv %s377_s28  ;;  %s210_s23 = ssub.s32 0, %s377_s28  ;;  %s222_s12 = ssub.s32 4294967168, %s377_s28  ;;  %v216_v16 = vld [vmem:[%s164_s25 + $0x8] sm:$0xff] }
  0x50   : > { %v204_v4 = vsub.s32 %v200_v1, %v203_v3  ;;  %v202_v7 = vand.u32 127, %v201_v6  ;;  %v211_v8 = vstv %s210_s23  ;;  %v223_v9 = vstv %s222_s12  ;;  %v229_v21 = vld [vmem:[#allocation2] sm:$0xff]  ;;  %p379_p7 = scmp.ne.s32.totalorder %s628_s15, 1 }
  0x51   : > { %vm239_vm4 = vcmp.eq.s32.totalorder (!%p379_p7), %v200_v1, 0  ;;  %vm241_vm5 = vcmask (!%p379_p7), 7168  }
  0x52   : > { %207 = vperm.xlu0 %491, %v204_v4   ;;  %v378_v5 = vadd.s32 4294967168, %v204_v4  ;;  %vm212_vm0 = vcmp.eq.s32.totalorder %v202_v7, %v211_v8  ;;  %vm224_vm1 = vcmp.eq.s32.totalorder %v202_v7, %v223_v9 }
  0x53   : > { %v213_v12 = vsel %vm212_vm0, 0.0, %v649_v11  ;;  %v225_v13 = vsel %vm224_vm1, 0.0, %v649_v11 }
  0x56   : > { %219 = vperm.xlu0 %491, %v378_v5  }
  0xd1   : > { %v208_v10 = vpop.permute.xlu0 %207 }
  0xd2   : > { %vm209_vm2 = vcmp.eq.s32.totalorder %v202_v7, %v208_v10 }
  0xd3   : > { %v214_v15 = vsel %vm209_vm2, -0.9, %v213_v12 }
  0xd4   : > { %v215_v19 = vmul.f32 %v214_v15, %v205_v14 }
  0xd5   : > { %v220_v17 = vpop.permute.xlu0 %219 }
  0xd6   : > { %vm221_vm3 = vcmp.eq.s32.totalorder %v202_v7, %v220_v17 }
  0xd7   : > { %v226_v18 = vsel %vm221_vm3, -0.9, %v225_v13 }
  0xd8   : > { %v227_v20 = vmul.f32 %v226_v18, %v216_v16  ;;  %235 = sbr.rel (%p379_p7) target bundleno = 580 (0x244), region = 40 }
  0xda   : > { %v228_v22 = vadd.f32 %v227_v20, %v215_v19 }
  0xdc   : > { %v230_v23 = vadd.f32 %v229_v21, %v228_v22 }
  0xde   : > { %231 = vst [vmem:[#allocation2] sm:$0xff] %v230_v23 }
  0xe5   : > { %v236_v24 = vld [vmem:[#allocation2] sm:$0xff] }
  0xe6   : > { %237 = vadd.xlane.f32.xlu0 %v236_v24 }
 0x173   : > { %v238_v25 = vpop.xlane.xlu0 %237 }
 0x174   : > { %v240_v26 = vsel %vm239_vm4, 0.0, %v238_v25 }
 0x175   : > { %v242_v27 = vsel %vm241_vm5, %v240_v26, 0.0 }
 0x176   : > { %243 = vadd.xlane.f32.xlu0 %v242_v27 }
 0x203   : > { %v244_v28 = vpop.xlane.xlu0 %243 }
 0x204   : > { %v245_v29 = vrot.slane %v244_v28, 4 }
 0x206   : > { %v246_v30 = vadd.f32 %v245_v29, %v244_v28 }
 0x208   : > { %v247_v31 = vrot.slane %v246_v30, 2 }
 0x20a   : > { %v248_v32 = vadd.f32 %v247_v31, %v246_v30 }
 0x20c   : > { %v249_v33 = vrot.slane %v248_v32, 1 }
 0x20e   : > { %v250_v34 = vadd.f32 %v249_v33, %v248_v32 }
 0x210   : > { %384 = vpush %v250_v34 }
 0x241   : > { %s385_s26 = spop %384 }
 0x242   : > { %v252_v35 = vstv %s385_s26 }
 0x243   : > { %253 = vst [vmem:[%s188_s21] sm:$0xff] %v252_v35 }
 0x244 PF: > { %s381_s15 = sshll.u32 %s632_s16, 7  ;;  %s268_s8 = sshll.u32 %s188_s21, 4  ;;  %s269_s8 = int_to_ptr.vmem [resolvable:$true] %s268_s8 }
 0x245   : > { %s844_s27 = scalar_lea.hbm %s906_s2, %s381_s15  ;;  %s255_s30 = scalar_lea.sflag [#allocation5], %s186_s22 }
 0x246   : > { %s522_s7 = scalar_lea.vmem %s269_s8, 128  ;;  %p919_p10 = scmp.ne.s32.totalorder %s914_s3, 0 }
 0x247   : > { %p523_p4 = scmp.ne.s32.totalorder %s269_s8, %s522_s7  ;;  %s650_s24 = smov [#allocation6]  }
 0x248   : > { %s526_s28 = sshll.u32 %s650_s24, 4  ;;  %s527_s28 = int_to_ptr.vmem [resolvable:$false] %s526_s28 }
 0x249   : > { %p524_p1 = pnand %p523_p4, %p919_p10  ;;  %s528_s23 = scalar_lea.vmem %s527_s28, 256 }
 0x24a   : > { %p529_p9 = scmp.lt.s32.totalorder %s269_s8, %s527_s28  ;;  %p530_p11 = scmp.lt.s32.totalorder %s528_s23, %s522_s7 }
 0x24b   : > { %p525_p8 = pneg %p524_p1 }
 0x24c   : > { %p531_p13 = por %p530_p11, %p529_p9 }
 0x24e   : > { %p532_p0 = pnand %p531_p13, %p525_p8 }
 0x250   : > { %535 = shalt.err (!%p532_p0)
}
 0x251   : > { %s536_s16 = scalar_lea.hbm %s844_s27, 128  ;;  %s540_s21 = scalar_lea.hbm %s906_s2, 256 }
 0x252   : > { %p537_p5 = scmp.ne.s32.totalorder %s844_s27, %s536_s16  ;;  %p541_p12 = scmp.lt.u32.totalorder %s844_s27, %s906_s2 }
 0x253   : > { %p542_p2 = scmp.lt.u32.totalorder %s540_s21, %s536_s16  ;;  %p544_p4 = scmp.lt.u32.totalorder %s536_s16, %s844_s27 }
 0x254   : > { %p538_p6 = pnand %p537_p5, %p919_p10 }
 0x255   : > { %p543_p7 = por %p542_p2, %p541_p12 }
 0x256   : > { %p539_p3 = pneg %p538_p6 }
 0x257   : > { %p545_p1 = por %p544_p4, %p543_p7 }
 0x259   : > { %p546_p8 = pnand %p545_p1, %p539_p3 }
 0x25b   : > { %549 = shalt.err (!%p546_p8)
}
 0x25c   : > { %388 = dma.vmem_to_hbm [thread:$0]  (%p919_p10), %s269_s8, 128, %s844_s27, %s255_s30  }
 0x25d PF: > { %p399_p9 = scmp.ge.s32.totalorder %s644_s19, 2  ;;  %s280_s15 = sand.u32 1, %s604_s9  }
 0x25e   : > { %p920_p11 = scmp.ne.s32.totalorder %s915_s6, 0  ;;  %s281_s20 = scalar_lea.sflag [#allocation5], %s280_s15 }
 0x260   : > { %p395_p13 = pnand %p399_p9, %p920_p11 }
 0x262   : > { %599 = dma.done.wait (!%p395_p13), %s281_s20, 128  }
 0x263   : > { %601 = vsyncadd (!%p395_p13), %s281_s20, 4294967168  ;;  %s18_s19 = sadd.s32 1, %s644_s19   ;;  %s921_s3 = sld [smem:[#allocation9_spill]] }
 0x264   : > { %p15_p0 = scmp.ge.s32.totalorder %s18_s19, 6   ;;  %s922_s25 = sld [smem:[#allocation10_spill]] }
 0x265   : > { %s923_s9 = smov %s608_s10  ;;  %s924_s10 = smov %s612_s11 }
 0x266   : > { %s925_s11 = smov %s753_s4  ;;  %s926_s12 = smov %s620_s13 }
 0x267   : > { %s927_s13 = smov %s624_s14  ;;  %s928_s14 = smov %s756_s5 }
 0x268   : > { %s929_s15 = smov %s636_s17  ;;  %s930_s16 = smov %s640_s18 }
 0x269   : > { %s931_s17 = smov %s921_s3  ;;  %17 = sbr.rel (!%p15_p0) target bundleno = 9 (0x9), region = 84 }
 0x26a   : > { %s932_s18 = smov %s922_s25 }
 0x270   :  { %286 = vsyncpa [#allocation4], 1 }
 0x271   :  { %288 = vsyncpa [#allocation4 + $0x1], 1 }
 0x272   :  { %289 = vsyncpa [#allocation5], 1 }
 0x273   :  { %291 = vsyncpa [#allocation5 + $0x1], 1 }

</bundles_post_ra>
